<compile_context>
chip_gen: v7x
topology: tpu7x:2x2x1
jax: 0.10.0
libtpu: 0.0.40
codegen_flags: <defaults>
</compile_context>

<pallas_src>
import functools

import jax
import jax.numpy as jnp
from jax import lax
from jax.experimental import pallas as pl
from jax.experimental.pallas import tpu as pltpu

DICE_EPS = 1e-6
DICE_BETA = 1.0


# ---------------------------------------------------------------------------
# Kernel 1: softmax + one-hot + per-pixel errors + per-tile dice partial sums
# ---------------------------------------------------------------------------
def _dice_err_kernel(logits_ref, labels_ref, err_ref, fg_ref,
                     inter_ref, gts_ref, psum_ref):
    logits = logits_ref[...].astype(jnp.float32)        # (C, TP)
    labels = labels_ref[...]                            # (1, TP) int32
    C, TP = logits.shape

    # softmax over the class (sublane) axis
    m = jnp.max(logits, axis=0, keepdims=True)
    e = jnp.exp(logits - m)
    probs = e / jnp.sum(e, axis=0, keepdims=True)       # (C, TP)

    class_ids = lax.broadcasted_iota(jnp.int32, (C, TP), 0)
    onehot = (class_ids == labels).astype(jnp.float32)  # (C, TP)

    err_ref[...] = jnp.abs(onehot - probs)
    fg_ref[...] = onehot.astype(jnp.bfloat16)           # exact 0/1 -> bf16 lossless

    # per-tile dice partials; fp/fn reconstructed in the wrapper as
    # fp = psum - inter, fn = gts - inter (avoids two extra (C,TP) multiplies).
    inter_ref[0, 0] = jnp.sum(probs * onehot, axis=1, keepdims=True)   # (C, 1)
    gts_ref[0, 0] = jnp.sum(onehot, axis=1, keepdims=True)             # (C, 1)
    psum_ref[0, 0] = jnp.sum(probs, axis=1, keepdims=True)             # (C, 1)


# ---------------------------------------------------------------------------
# Kernel 2: Lovasz-softmax from sorted errors / foreground masks
# ---------------------------------------------------------------------------
def _lovasz_kernel(gts_ref, err_ref, fg_ref, u_ref, out_ref,
                   carry_ref, acc_ref, *, num_classes):
    c = pl.program_id(0)          # class index
    t = pl.program_id(1)          # row-tile index within the class

    @pl.when((c == 0) & (t == 0))
    def _():
        acc_ref[...] = jnp.zeros_like(acc_ref)

    @pl.when(t == 0)              # reset running fg count at each class start
    def _():
        carry_ref[...] = jnp.zeros_like(carry_ref)

    err = err_ref[...]                           # (R, T) f32, sorted desc (flattened)
    fg16 = fg_ref[...]                           # (R, T) bf16, exact 0/1
    fgf = fg16.astype(jnp.float32)
    R, T = err.shape

    # intra-row inclusive prefix sums on the MXU (bf16 operands, f32 accumulate)
    cs_local = jnp.dot(fg16, u_ref[...], preferred_element_type=jnp.float32)

    # strict prefix of row totals -> carry across the R rows of this tile
    tot = jnp.sum(fgf, axis=1, keepdims=True)                      # (R, 1)
    lo = (lax.broadcasted_iota(jnp.int32, (R, R), 0)
          > lax.broadcasted_iota(jnp.int32, (R, R), 1)).astype(jnp.float32)
    rowcarry = jnp.dot(lo, tot, preferred_element_type=jnp.float32)  # (R, 1)

    carry_in = carry_ref[...]                                      # (1, 1)
    cs = cs_local + rowcarry + carry_in        # inclusive cumsum of fg (exact ints)

    g = gts_ref[0, c]                          # total fg count of this class (scalar)

    r_idx = lax.broadcasted_iota(jnp.int32, (R, T), 0)
    j_idx = lax.broadcasted_iota(jnp.int32, (R, T), 1)
    pos = (t * (R * T) + r_idx * T + j_idx + 1).astype(jnp.float32)  # 1-based

    inter = g - cs
    union = g + pos - cs                       # >= 1 everywhere
    # previous-position jaccard recomputed from (cs - fg, pos - 1): no shift matmul,
    # no cross-tile jaccard carry.  union_prev == 0 only at a class's first element
    # when the class is absent (g == 0); there the previous ratio must be 1.
    cs_prev = cs - fgf
    inter_prev = g - cs_prev
    union_prev = g + (pos - 1.0) - cs_prev
    ratio = inter / union
    prev_ratio = jnp.where(union_prev > 0.0,
                           inter_prev / jnp.maximum(union_prev, 1.0), 1.0)
    grad = prev_ratio - ratio                  # == jaccard - jaccard_prev

    contrib = jnp.sum(jnp.sum(err * grad, axis=1, keepdims=True),
                      axis=0, keepdims=True)                        # (1, 1)
    acc_ref[...] += contrib
    carry_ref[...] = carry_in + jnp.sum(tot, axis=0, keepdims=True)

    @pl.when((c == num_classes - 1) & (t == pl.num_programs(1) - 1))
    def _():
        out_ref[...] = acc_ref[...] * (1.0 / num_classes)


# ---------------------------------------------------------------------------
# Wrapper
# ---------------------------------------------------------------------------
def _pick_lane_tile(hw, max_tile=4096):
    best = None
    t = 128
    while t <= min(hw, max_tile):
        if hw % t == 0:
            best = t
        t += 128
    if best is None:
        # TODO(synk): H*W not a multiple of 128 — fall back to a full-image lane
        # block; masked/padded ragged tiling is not implemented here.
        best = hw
    return best


def combined_dice_lovasz_loss(y_pr, y_gt, dice_weight=1.0, lovasz_weight=1.0):
    """y_pr: (B, C, H, W) float logits; y_gt: (B, H, W) int labels or (B, C, H, W) one-hot."""
    y_pr = y_pr.astype(jnp.float32)
    if y_gt.ndim == 4:
        y_gt = jnp.argmax(y_gt, axis=1)
    B, C, H, W = y_pr.shape
    HW = H * W
    P = B * HW

    # Pure views — no HBM transpose of the logits.
    logits = y_pr.reshape(B, C, HW)
    labels = y_gt.reshape(B, 1, HW).astype(jnp.int32)

    TP = _pick_lane_tile(HW)
    n_px_tiles = HW // TP

    err, fg, inter_p, gts_p, psum_p = pl.pallas_call(
        _dice_err_kernel,
        grid=(B, n_px_tiles),
        in_specs=[
            pl.BlockSpec((None, C, TP), lambda b, t: (b, 0, t)),
            pl.BlockSpec((None, 1, TP), lambda b, t: (b, 0, t)),
        ],
        out_specs=(
            pl.BlockSpec((C, TP), lambda b, t: (0, b * n_px_tiles + t)),
            pl.BlockSpec((C, TP), lambda b, t: (0, b * n_px_tiles + t)),
            pl.BlockSpec((1, 1, C, 1), lambda b, t: (b, t, 0, 0)),
            pl.BlockSpec((1, 1, C, 1), lambda b, t: (b, t, 0, 0)),
            pl.BlockSpec((1, 1, C, 1), lambda b, t: (b, t, 0, 0)),
        ),
        out_shape=(
            jax.ShapeDtypeStruct((C, P), jnp.float32),
            jax.ShapeDtypeStruct((C, P), jnp.bfloat16),
            jax.ShapeDtypeStruct((B, n_px_tiles, C, 1), jnp.float32),
            jax.ShapeDtypeStruct((B, n_px_tiles, C, 1), jnp.float32),
            jax.ShapeDtypeStruct((B, n_px_tiles, C, 1), jnp.float32),
        ),
        compiler_params=pltpu.CompilerParams(
            dimension_semantics=("parallel", "parallel")),
    )(logits, labels)

    # ---- Dice loss from the per-tile partial sums (in JAX, tiny reductions) ----
    inter = jnp.sum(inter_p, axis=(0, 1))[:, 0]        # (C,)
    gts = jnp.sum(gts_p, axis=(0, 1))[:, 0]            # (C,)
    psum = jnp.sum(psum_p, axis=(0, 1))[:, 0]          # (C,)
    fp = psum - inter
    fn = gts - inter
    b2 = DICE_BETA * DICE_BETA
    dice_per_class = ((1.0 + b2) * inter + DICE_EPS) / (
        (1.0 + b2) * inter + b2 * fn + fp + DICE_EPS)
    dice_loss = 1.0 - jnp.mean(dice_per_class)

    # ---- Lovasz-softmax ----
    # TODO(synk): the per-class descending sort has no clean Pallas TPU
    # primitive; it stays in XLA (lax.sort) between the two kernels.
    neg_sorted, fg_sorted = lax.sort((-err, fg), dimension=1, num_keys=1)
    err_sorted = -neg_sorted

    T = 256                                   # MXU-friendly prefix-sum tile
    R = 64 if P >= 64 * T else 8              # rows of T handled per grid step
    chunk = R * T
    P_pad = ((P + chunk - 1) // chunk) * chunk
    pad = P_pad - P
    if pad:
        # padded pixels: err = 0, fg = 0 -> they land at the tail and add zero.
        err_sorted = jnp.pad(err_sorted, ((0, 0), (0, pad)))
        fg_sorted = jnp.pad(fg_sorted, ((0, 0), (0, pad)))
    n_rows = P_pad // T
    n_steps = n_rows // R

    err3 = err_sorted.reshape(C, n_rows, T)
    fg3 = fg_sorted.reshape(C, n_rows, T)
    # (T,T) inclusive upper-triangular matrix, built once and passed in (bf16: 0/1 exact).
    u = (jnp.arange(T)[:, None] <= jnp.arange(T)[None, :]).astype(jnp.bfloat16)
    gts_in = gts.reshape(1, C).astype(jnp.float32)

    lovasz = pl.pallas_call(
        functools.partial(_lovasz_kernel, num_classes=C),
        grid=(C, n_steps),
        in_specs=[
            pl.BlockSpec(memory_space=pltpu.MemorySpace.SMEM),       # gts (1, C)
            pl.BlockSpec((None, R, T), lambda c, t: (c, t, 0)),      # sorted errors
            pl.BlockSpec((None, R, T), lambda c, t: (c, t, 0)),      # sorted fg (bf16)
            pl.BlockSpec((T, T), lambda c, t: (0, 0)),               # triangular matrix
        ],
        out_specs=pl.BlockSpec((1, 1), lambda c, t: (0, 0)),
        out_shape=jax.ShapeDtypeStruct((1, 1), jnp.float32),
        scratch_shapes=[
            pltpu.VMEM((1, 1), jnp.float32),   # running fg count of current class
            pltpu.VMEM((1, 1), jnp.float32),   # loss accumulator
        ],
        compiler_params=pltpu.CompilerParams(
            dimension_semantics=("arbitrary", "arbitrary")),
    )(gts_in, err3, fg3, u)

    return dice_weight * dice_loss + lovasz_weight * lovasz[0, 0]


# ---------------------------------------------------------------------------
# Pure-JAX reference mirroring the PyTorch module (classes='all', per_image=False)
# ---------------------------------------------------------------------------
def _reference_loss(y_pr, y_gt, dice_weight=1.0, lovasz_weight=1.0):
    y_pr = y_pr.astype(jnp.float32)
    if y_gt.ndim == 4:
        y_gt = jnp.argmax(y_gt, axis=1)
    B, C, H, W = y_pr.shape
    probs = jax.nn.softmax(y_pr, axis=1)
    onehot = jax.nn.one_hot(y_gt, C, axis=1, dtype=jnp.float32)
    inter = jnp.sum(probs * onehot, axis=(0, 2, 3))
    fp = jnp.sum(probs * (1.0 - onehot), axis=(0, 2, 3))
    fn = jnp.sum((1.0 - probs) * onehot, axis=(0, 2, 3))
    b2 = DICE_BETA * DICE_BETA
    dice = jnp.mean(((1 + b2) * inter + DICE_EPS) /
                    ((1 + b2) * inter + b2 * fn + fp + DICE_EPS))
    dice_loss = 1.0 - dice

    p = jnp.transpose(probs, (0, 2, 3, 1)).reshape(-1, C)
    lab = y_gt.reshape(-1)
    losses = []
    for c in range(C):
        fg_c = (lab == c).astype(jnp.float32)
        err = jnp.abs(fg_c - p[:, c])
        order = jnp.argsort(-err)
        err_s = err[order]
        fg_s = fg_c[order]
        g = jnp.sum(fg_s)
        intersection = g - jnp.cumsum(fg_s)
        union = g + jnp.cumsum(1.0 - fg_s)
        jac = 1.0 - intersection / union
        grad = jnp.concatenate([jac[:1], jac[1:] - jac[:-1]])
        losses.append(jnp.dot(err_s, grad))
    lovasz = jnp.mean(jnp.stack(losses))
    return dice_weight * dice_loss + lovasz_weight * lovasz


if __name__ == "__main__":
    key = jax.random.PRNGKey(0)
    k1, k2 = jax.random.split(key)
    B, C, H, W = 2, 4, 16, 16
    y_pr = jax.random.normal(k1, (B, C, H, W), dtype=jnp.float32)
    y_gt = jax.random.randint(k2, (B, H, W), 0, C, dtype=jnp.int32)

    loss_fn = jax.jit(combined_dice_lovasz_loss)
    loss = jax.block_until_ready(loss_fn(y_pr, y_gt))

    ref = jax.block_until_ready(_reference_loss(y_pr, y_gt))
    assert jnp.isfinite(loss), "non-finite loss"
    assert abs(float(loss) - float(ref)) < 1e-3, (float(loss), float(ref))

    print("KERNEL_OK")
</pallas_src>

<mosaic_0001>
module attributes {stable_mosaic.version = 11 : i64} {
  func.func @_dice_err_kernel(%arg0: i32, %arg1: i32, %arg2: memref<1x4x256xf32, #tpu.memory_space<vmem>>, %arg3: memref<1x1x256xi32, #tpu.memory_space<vmem>>, %arg4: memref<4x256xf32, #tpu.memory_space<vmem>>, %arg5: memref<4x256xbf16, #tpu.memory_space<vmem>>, %arg6: memref<1x1x4x1xf32, #tpu.memory_space<vmem>>, %arg7: memref<1x1x4x1xf32, #tpu.memory_space<vmem>>, %arg8: memref<1x1x4x1xf32, #tpu.memory_space<vmem>>) attributes {dimension_semantics = [#tpu.dimension_semantics<parallel>, #tpu.dimension_semantics<parallel>], iteration_bounds = array<i64: 2, 1>, scalar_prefetch = 0 : i64, scratch_operands = 0 : i64, tpu.core_type = #tpu.core_type<tc>, window_params = [{transform_indices = @transform_0, window_bounds = array<i64: 1, 4, 256>}, {transform_indices = @transform_1, window_bounds = array<i64: 1, 1, 256>}, {transform_indices = @transform_2, window_bounds = array<i64: 4, 256>}, {transform_indices = @transform_3, window_bounds = array<i64: 4, 256>}, {transform_indices = @transform_4, window_bounds = array<i64: 1, 1, 4, 1>}, {transform_indices = @transform_5, window_bounds = array<i64: 1, 1, 4, 1>}, {transform_indices = @transform_6, window_bounds = array<i64: 1, 1, 4, 1>}]} {
    %c0 = arith.constant 0 : index
    %c0_0 = arith.constant 0 : index
    %c0_1 = arith.constant 0 : index
    %0 = vector.load %arg2[%c0, %c0_0, %c0_1] : memref<1x4x256xf32, #tpu.memory_space<vmem>>, vector<1x4x256xf32>
    %1 = vector.shape_cast %0 : vector<1x4x256xf32> to vector<4x256xf32>
    %c0_2 = arith.constant 0 : index
    %c0_3 = arith.constant 0 : index
    %c0_4 = arith.constant 0 : index
    %2 = vector.load %arg3[%c0_2, %c0_3, %c0_4] : memref<1x1x256xi32, #tpu.memory_space<vmem>>, vector<1x1x256xi32>
    %3 = vector.shape_cast %2 : vector<1x1x256xi32> to vector<1x256xi32>
    %cst = arith.constant dense<0xFF800000> : vector<256xf32>
    %4 = vector.multi_reduction <maximumf>, %1, %cst [0] : vector<4x256xf32> to vector<256xf32>
    %5 = vector.shape_cast %4 : vector<256xf32> to vector<1x256xf32>
    %6 = vector.broadcast %5 : vector<1x256xf32> to vector<4x256xf32>
    %7 = arith.subf %1, %6 : vector<4x256xf32>
    %8 = math.exp %7 : vector<4x256xf32>
    %cst_5 = arith.constant dense<0.000000e+00> : vector<256xf32>
    %9 = vector.multi_reduction <add>, %8, %cst_5 [0] : vector<4x256xf32> to vector<256xf32>
    %10 = vector.shape_cast %9 : vector<256xf32> to vector<1x256xf32>
    %11 = vector.broadcast %10 : vector<1x256xf32> to vector<4x256xf32>
    %12 = arith.divf %8, %11 : vector<4x256xf32>
    %13 = tpu.iota {dimensions = array<i32: 0>} : vector<4x256xi32>
    %14 = vector.broadcast %3 : vector<1x256xi32> to vector<4x256xi32>
    %15 = arith.cmpi eq, %13, %14 : vector<4x256xi32>
    %16 = arith.extui %15 : vector<4x256xi1> to vector<4x256xi32>
    %17 = arith.sitofp %16 : vector<4x256xi32> to vector<4x256xf32>
    %18 = arith.subf %17, %12 : vector<4x256xf32>
    %19 = math.absf %18 : vector<4x256xf32>
    %c0_6 = arith.constant 0 : index
    %c0_7 = arith.constant 0 : index
    %20 = vector.load %arg4[%c0_6, %c0_7] : memref<4x256xf32, #tpu.memory_space<vmem>>, vector<4x256xf32>
    tpu.vector_store %arg4[%c0_6, %c0_7], %19 {strides = array<i32>} : memref<4x256xf32, #tpu.memory_space<vmem>>, vector<4x256xf32>,
    %21 = arith.truncf %17 : vector<4x256xf32> to vector<4x256xbf16>
    %c0_8 = arith.constant 0 : index
    %c0_9 = arith.constant 0 : index
    %22 = vector.load %arg5[%c0_8, %c0_9] : memref<4x256xbf16, #tpu.memory_space<vmem>>, vector<4x256xbf16>
    tpu.vector_store %arg5[%c0_8, %c0_9], %21 {strides = array<i32>} : memref<4x256xbf16, #tpu.memory_space<vmem>>, vector<4x256xbf16>,
    %23 = arith.mulf %12, %17 : vector<4x256xf32>
    %cst_10 = arith.constant dense<0.000000e+00> : vector<4xf32>
    %24 = vector.multi_reduction <add>, %23, %cst_10 [1] : vector<4x256xf32> to vector<4xf32>
    %25 = vector.shape_cast %24 : vector<4xf32> to vector<4x1xf32>
    %c0_11 = arith.constant 0 : index
    %c0_12 = arith.constant 0 : index
    %c0_13 = arith.constant 0 : index
    %c0_14 = arith.constant 0 : index
    %26 = vector.load %arg6[%c0_11, %c0_12, %c0_13, %c0_14] : memref<1x1x4x1xf32, #tpu.memory_space<vmem>>, vector<1x1x4x1xf32>
    %27 = vector.shape_cast %26 : vector<1x1x4x1xf32> to vector<4x1xf32>
    %28 = vector.shape_cast %25 : vector<4x1xf32> to vector<1x1x4x1xf32>
    tpu.vector_store %arg6[%c0_11, %c0_12, %c0_13, %c0_14], %28 {strides = array<i32>} : memref<1x1x4x1xf32, #tpu.memory_space<vmem>>, vector<1x1x4x1xf32>,
    %cst_15 = arith.constant dense<0.000000e+00> : vector<4xf32>
    %29 = vector.multi_reduction <add>, %17, %cst_15 [1] : vector<4x256xf32> to vector<4xf32>
    %30 = vector.shape_cast %29 : vector<4xf32> to vector<4x1xf32>
    %c0_16 = arith.constant 0 : index
    %c0_17 = arith.constant 0 : index
    %c0_18 = arith.constant 0 : index
    %c0_19 = arith.constant 0 : index
    %31 = vector.load %arg7[%c0_16, %c0_17, %c0_18, %c0_19] : memref<1x1x4x1xf32, #tpu.memory_space<vmem>>, vector<1x1x4x1xf32>
    %32 = vector.shape_cast %31 : vector<1x1x4x1xf32> to vector<4x1xf32>
    %33 = vector.shape_cast %30 : vector<4x1xf32> to vector<1x1x4x1xf32>
    tpu.vector_store %arg7[%c0_16, %c0_17, %c0_18, %c0_19], %33 {strides = array<i32>} : memref<1x1x4x1xf32, #tpu.memory_space<vmem>>, vector<1x1x4x1xf32>,
    %cst_20 = arith.constant dense<0.000000e+00> : vector<4xf32>
    %34 = vector.multi_reduction <add>, %12, %cst_20 [1] : vector<4x256xf32> to vector<4xf32>
    %35 = vector.shape_cast %34 : vector<4xf32> to vector<4x1xf32>
    %c0_21 = arith.constant 0 : index
    %c0_22 = arith.constant 0 : index
    %c0_23 = arith.constant 0 : index
    %c0_24 = arith.constant 0 : index
    %36 = vector.load %arg8[%c0_21, %c0_22, %c0_23, %c0_24] : memref<1x1x4x1xf32, #tpu.memory_space<vmem>>, vector<1x1x4x1xf32>
    %37 = vector.shape_cast %36 : vector<1x1x4x1xf32> to vector<4x1xf32>
    %38 = vector.shape_cast %35 : vector<4x1xf32> to vector<1x1x4x1xf32>
    tpu.vector_store %arg8[%c0_21, %c0_22, %c0_23, %c0_24], %38 {strides = array<i32>} : memref<1x1x4x1xf32, #tpu.memory_space<vmem>>, vector<1x1x4x1xf32>,
    return
  }
  func.func @transform_0(%arg0: i32, %arg1: i32) -> (i32, i32, i32) {
    %c0_i32 = arith.constant 0 : i32
    %c0_i32_0 = arith.constant 0 : i32
    return %arg0, %c0_i32, %arg1 : i32, i32, i32
  }
  func.func @transform_1(%arg0: i32, %arg1: i32) -> (i32, i32, i32) {
    %c0_i32 = arith.constant 0 : i32
    %c0_i32_0 = arith.constant 0 : i32
    return %arg0, %c0_i32, %arg1 : i32, i32, i32
  }
  func.func @transform_2(%arg0: i32, %arg1: i32) -> (i32, i32) {
    %c1_i32 = arith.constant 1 : i32
    %0 = arith.muli %arg0, %c1_i32 : i32
    %1 = arith.addi %0, %arg1 : i32
    %c0_i32 = arith.constant 0 : i32
    %c0_i32_0 = arith.constant 0 : i32
    return %c0_i32, %1 : i32, i32
  }
  func.func @transform_3(%arg0: i32, %arg1: i32) -> (i32, i32) {
    %c1_i32 = arith.constant 1 : i32
    %0 = arith.muli %arg0, %c1_i32 : i32
    %1 = arith.addi %0, %arg1 : i32
    %c0_i32 = arith.constant 0 : i32
    %c0_i32_0 = arith.constant 0 : i32
    return %c0_i32, %1 : i32, i32
  }
  func.func @transform_4(%arg0: i32, %arg1: i32) -> (i32, i32, i32, i32) {
    %c0_i32 = arith.constant 0 : i32
    %c0_i32_0 = arith.constant 0 : i32
    %c0_i32_1 = arith.constant 0 : i32
    return %arg0, %arg1, %c0_i32, %c0_i32_0 : i32, i32, i32, i32
  }
  func.func @transform_5(%arg0: i32, %arg1: i32) -> (i32, i32, i32, i32) {
    %c0_i32 = arith.constant 0 : i32
    %c0_i32_0 = arith.constant 0 : i32
    %c0_i32_1 = arith.constant 0 : i32
    return %arg0, %arg1, %c0_i32, %c0_i32_0 : i32, i32, i32, i32
  }
  func.func @transform_6(%arg0: i32, %arg1: i32) -> (i32, i32, i32, i32) {
    %c0_i32 = arith.constant 0 : i32
    %c0_i32_0 = arith.constant 0 : i32
    %c0_i32_1 = arith.constant 0 : i32
    return %arg0, %arg1, %c0_i32, %c0_i32_0 : i32, i32, i32, i32
  }
}

module attributes {stable_mosaic.version = 11 : i64} {
  func.func @_lovasz_kernel(%arg0: i32, %arg1: i32, %arg2: memref<1x4xf32, #tpu.memory_space<smem>>, %arg3: memref<1x8x256xf32, #tpu.memory_space<vmem>>, %arg4: memref<1x8x256xbf16, #tpu.memory_space<vmem>>, %arg5: memref<256x256xbf16, #tpu.memory_space<vmem>>, %arg6: memref<1x1xf32, #tpu.memory_space<vmem>>, %arg7: memref<1x1xf32, #tpu.memory_space<vmem>>, %arg8: memref<1x1xf32, #tpu.memory_space<vmem>>) attributes {dimension_semantics = [#tpu.dimension_semantics<arbitrary>, #tpu.dimension_semantics<arbitrary>], iteration_bounds = array<i64: 4, 1>, scalar_prefetch = 0 : i64, scratch_operands = 2 : i64, tpu.core_type = #tpu.core_type<tc>, window_params = [{transform_indices = @transform_0, window_bounds = array<i64: 1, 4>}, {transform_indices = @transform_1, window_bounds = array<i64: 1, 8, 256>}, {transform_indices = @transform_2, window_bounds = array<i64: 1, 8, 256>}, {pipeline_mode = #tpu.pipeline_mode<synchronous>, transform_indices = @transform_3, window_bounds = array<i64: 256, 256>}, {pipeline_mode = #tpu.pipeline_mode<synchronous>, transform_indices = @transform_4, window_bounds = array<i64: 1, 1>}]} {
    %c0_i32 = arith.constant 0 : i32
    %0 = arith.cmpi eq, %arg0, %c0_i32 : i32
    %c0_i32_0 = arith.constant 0 : i32
    %1 = arith.cmpi eq, %arg1, %c0_i32_0 : i32
    %2 = arith.andi %0, %1 : i1
    %3 = arith.extui %2 : i1 to i32
    %c0_i32_1 = arith.constant 0 : i32
    %4 = arith.cmpi ne, %3, %c0_i32_1 : i32
    scf.if %4 {
      %cst_31 = arith.constant 0.000000e+00 : f32
      %80 = vector.broadcast %cst_31 : f32 to vector<1x1xf32>
      %c0_32 = arith.constant 0 : index
      %c0_33 = arith.constant 0 : index
      %81 = vector.load %arg8[%c0_32, %c0_33] : memref<1x1xf32, #tpu.memory_space<vmem>>, vector<1x1xf32>
      tpu.vector_store %arg8[%c0_32, %c0_33], %80 {strides = array<i32>} : memref<1x1xf32, #tpu.memory_space<vmem>>, vector<1x1xf32>,
    } else {
    }
    %c0_i32_2 = arith.constant 0 : i32
    %5 = arith.cmpi eq, %arg1, %c0_i32_2 : i32
    %6 = arith.extui %5 : i1 to i32
    %c0_i32_3 = arith.constant 0 : i32
    %7 = arith.cmpi ne, %6, %c0_i32_3 : i32
    scf.if %7 {
      %cst_31 = arith.constant 0.000000e+00 : f32
      %80 = vector.broadcast %cst_31 : f32 to vector<1x1xf32>
      %c0_32 = arith.constant 0 : index
      %c0_33 = arith.constant 0 : index
      %81 = vector.load %arg7[%c0_32, %c0_33] : memref<1x1xf32, #tpu.memory_space<vmem>>, vector<1x1xf32>
      tpu.vector_store %arg7[%c0_32, %c0_33], %80 {strides = array<i32>} : memref<1x1xf32, #tpu.memory_space<vmem>>, vector<1x1xf32>,
    } else {
    }
    %c0 = arith.constant 0 : index
    %c0_4 = arith.constant 0 : index
    %c0_5 = arith.constant 0 : index
    %8 = vector.load %arg3[%c0, %c0_4, %c0_5] : memref<1x8x256xf32, #tpu.memory_space<vmem>>, vector<1x8x256xf32>
    %9 = vector.shape_cast %8 : vector<1x8x256xf32> to vector<8x256xf32>
    %c0_6 = arith.constant 0 : index
    %c0_7 = arith.constant 0 : index
    %c0_8 = arith.constant 0 : index
    %10 = vector.load %arg4[%c0_6, %c0_7, %c0_8] : memref<1x8x256xbf16, #tpu.memory_space<vmem>>, vector<1x8x256xbf16>
    %11 = vector.shape_cast %10 : vector<1x8x256xbf16> to vector<8x256xbf16>
    %12 = arith.extf %11 : vector<8x256xbf16> to vector<8x256xf32>
    %c0_9 = arith.constant 0 : index
    %c0_10 = arith.constant 0 : index
    %13 = vector.load %arg5[%c0_9, %c0_10] : memref<256x256xbf16, #tpu.memory_space<vmem>>, vector<256x256xbf16>
    %cst = arith.constant dense<0.000000e+00> : vector<8x256xf32>
    %14 = tpu.matmul %11, %13, %cst {dimension_numbers = #tpu.dot_dimension_numbers<[1], [0], [0], [1], [0, 0, 1, 1], [], []>} : vector<8x256xbf16>, vector<256x256xbf16>, vector<8x256xf32> -> vector<8x256xf32>
    %cst_11 = arith.constant dense<0.000000e+00> : vector<8xf32>
    %15 = vector.multi_reduction <add>, %12, %cst_11 [1] : vector<8x256xf32> to vector<8xf32>
    %16 = vector.shape_cast %15 : vector<8xf32> to vector<8x1xf32>
    %17 = tpu.iota {dimensions = array<i32: 0>} : vector<8x8xi32>
    %18 = tpu.iota {dimensions = array<i32: 1>} : vector<8x8xi32>
    %19 = arith.cmpi sgt, %17, %18 : vector<8x8xi32>
    %20 = arith.extui %19 : vector<8x8xi1> to vector<8x8xi32>
    %21 = arith.sitofp %20 : vector<8x8xi32> to vector<8x8xf32>
    %cst_12 = arith.constant dense<0.000000e+00> : vector<8x1xf32>
    %22 = tpu.matmul %21, %16, %cst_12 {dimension_numbers = #tpu.dot_dimension_numbers<[1], [0], [0], [1], [0, 0, 1, 1], [], []>} : vector<8x8xf32>, vector<8x1xf32>, vector<8x1xf32> -> vector<8x1xf32>
    %c0_13 = arith.constant 0 : index
    %c0_14 = arith.constant 0 : index
    %23 = vector.load %arg7[%c0_13, %c0_14] : memref<1x1xf32, #tpu.memory_space<vmem>>, vector<1x1xf32>
    %24 = vector.broadcast %22 : vector<8x1xf32> to vector<8x256xf32>
    %25 = arith.addf %14, %24 : vector<8x256xf32>
    %26 = vector.broadcast %23 : vector<1x1xf32> to vector<8x256xf32>
    %27 = arith.addf %25, %26 : vector<8x256xf32>
    %c0_15 = arith.constant 0 : index
    %28 = arith.index_cast %arg0 : i32 to index
    %29 = memref.load %arg2[%c0_15, %28] : memref<1x4xf32, #tpu.memory_space<smem>>
    %30 = tpu.iota {dimensions = array<i32: 0>} : vector<8x256xi32>
    %31 = tpu.iota {dimensions = array<i32: 1>} : vector<8x256xi32>
    %c2048_i32 = arith.constant 2048 : i32
    %32 = arith.muli %arg1, %c2048_i32 : i32
    %c256_i32 = arith.constant 256 : i32
    %33 = vector.broadcast %c256_i32 : i32 to vector<8x256xi32>
    %34 = arith.muli %30, %33 : vector<8x256xi32>
    %35 = vector.broadcast %32 : i32 to vector<8x256xi32>
    %36 = arith.addi %35, %34 : vector<8x256xi32>
    %37 = arith.addi %36, %31 : vector<8x256xi32>
    %c1_i32 = arith.constant 1 : i32
    %38 = vector.broadcast %c1_i32 : i32 to vector<8x256xi32>
    %39 = arith.addi %37, %38 : vector<8x256xi32>
    %40 = arith.sitofp %39 : vector<8x256xi32> to vector<8x256xf32>
    %41 = vector.broadcast %29 : f32 to vector<8x256xf32>
    %42 = arith.subf %41, %27 : vector<8x256xf32>
    %43 = vector.broadcast %29 : f32 to vector<8x256xf32>
    %44 = arith.addf %43, %40 : vector<8x256xf32>
    %45 = arith.subf %44, %27 : vector<8x256xf32>
    %46 = arith.subf %27, %12 : vector<8x256xf32>
    %47 = vector.broadcast %29 : f32 to vector<8x256xf32>
    %48 = arith.subf %47, %46 : vector<8x256xf32>
    %cst_16 = arith.constant 1.000000e+00 : f32
    %49 = vector.broadcast %cst_16 : f32 to vector<8x256xf32>
    %50 = arith.subf %40, %49 : vector<8x256xf32>
    %51 = vector.broadcast %29 : f32 to vector<8x256xf32>
    %52 = arith.addf %51, %50 : vector<8x256xf32>
    %53 = arith.subf %52, %46 : vector<8x256xf32>
    %54 = arith.divf %42, %45 : vector<8x256xf32>
    %cst_17 = arith.constant 0.000000e+00 : f32
    %55 = vector.broadcast %cst_17 : f32 to vector<8x256xf32>
    %56 = arith.cmpf ogt, %53, %55 : vector<8x256xf32>
    %cst_18 = arith.constant 1.000000e+00 : f32
    %57 = vector.broadcast %cst_18 : f32 to vector<8x256xf32>
    %58 = arith.maximumf %53, %57 : vector<8x256xf32>
    %59 = arith.divf %48, %58 : vector<8x256xf32>
    %cst_19 = arith.constant 1.000000e+00 : f32
    %60 = vector.broadcast %cst_19 : f32 to vector<8x256xf32>
    %61 = arith.select %56, %59, %60 : vector<8x256xi1>, vector<8x256xf32>
    %62 = arith.subf %61, %54 : vector<8x256xf32>
    %63 = arith.mulf %9, %62 : vector<8x256xf32>
    %cst_20 = arith.constant dense<0.000000e+00> : vector<8xf32>
    %64 = vector.multi_reduction <add>, %63, %cst_20 [1] : vector<8x256xf32> to vector<8xf32>
    %65 = vector.shape_cast %64 : vector<8xf32> to vector<8x1xf32>
    %cst_21 = arith.constant dense<0.000000e+00> : vector<1xf32>
    %66 = vector.multi_reduction <add>, %65, %cst_21 [0] : vector<8x1xf32> to vector<1xf32>
    %67 = vector.shape_cast %66 : vector<1xf32> to vector<1x1xf32>
    %c0_22 = arith.constant 0 : index
    %c0_23 = arith.constant 0 : index
    %68 = vector.load %arg8[%c0_22, %c0_23] : memref<1x1xf32, #tpu.memory_space<vmem>>, vector<1x1xf32>
    %69 = arith.addf %68, %67 : vector<1x1xf32>
    %c0_24 = arith.constant 0 : index
    %c0_25 = arith.constant 0 : index
    %70 = vector.load %arg8[%c0_24, %c0_25] : memref<1x1xf32, #tpu.memory_space<vmem>>, vector<1x1xf32>
    tpu.vector_store %arg8[%c0_24, %c0_25], %69 {strides = array<i32>} : memref<1x1xf32, #tpu.memory_space<vmem>>, vector<1x1xf32>,
    %cst_26 = arith.constant dense<0.000000e+00> : vector<1xf32>
    %71 = vector.multi_reduction <add>, %16, %cst_26 [0] : vector<8x1xf32> to vector<1xf32>
    %72 = vector.shape_cast %71 : vector<1xf32> to vector<1x1xf32>
    %73 = arith.addf %23, %72 : vector<1x1xf32>
    %c0_27 = arith.constant 0 : index
    %c0_28 = arith.constant 0 : index
    %74 = vector.load %arg7[%c0_27, %c0_28] : memref<1x1xf32, #tpu.memory_space<vmem>>, vector<1x1xf32>
    tpu.vector_store %arg7[%c0_27, %c0_28], %73 {strides = array<i32>} : memref<1x1xf32, #tpu.memory_space<vmem>>, vector<1x1xf32>,
    %c3_i32 = arith.constant 3 : i32
    %75 = arith.cmpi eq, %arg0, %c3_i32 : i32
    %c0_i32_29 = arith.constant 0 : i32
    %76 = arith.cmpi eq, %arg1, %c0_i32_29 : i32
    %77 = arith.andi %75, %76 : i1
    %78 = arith.extui %77 : i1 to i32
    %c0_i32_30 = arith.constant 0 : i32
    %79 = arith.cmpi ne, %78, %c0_i32_30 : i32
    scf.if %79 {
      %c0_31 = arith.constant 0 : index
      %c0_32 = arith.constant 0 : index
      %80 = vector.load %arg8[%c0_31, %c0_32] : memref<1x1xf32, #tpu.memory_space<vmem>>, vector<1x1xf32>
      %cst_33 = arith.constant 2.500000e-01 : f32
      %81 = vector.broadcast %cst_33 : f32 to vector<1x1xf32>
      %82 = arith.mulf %80, %81 : vector<1x1xf32>
      %c0_34 = arith.constant 0 : index
      %c0_35 = arith.constant 0 : index
      %83 = vector.load %arg6[%c0_34, %c0_35] : memref<1x1xf32, #tpu.memory_space<vmem>>, vector<1x1xf32>
      tpu.vector_store %arg6[%c0_34, %c0_35], %82 {strides = array<i32>} : memref<1x1xf32, #tpu.memory_space<vmem>>, vector<1x1xf32>,
    } else {
    }
    return
  }
  func.func @transform_0(%arg0: i32, %arg1: i32) -> (i32, i32) {
    %c0_i32 = arith.constant 0 : i32
    %c0_i32_0 = arith.constant 0 : i32
    %c0_i32_1 = arith.constant 0 : i32
    return %c0_i32, %c0_i32_0 : i32, i32
  }
  func.func @transform_1(%arg0: i32, %arg1: i32) -> (i32, i32, i32) {
    %c0_i32 = arith.constant 0 : i32
    %c0_i32_0 = arith.constant 0 : i32
    return %arg0, %arg1, %c0_i32 : i32, i32, i32
  }
  func.func @transform_2(%arg0: i32, %arg1: i32) -> (i32, i32, i32) {
    %c0_i32 = arith.constant 0 : i32
    %c0_i32_0 = arith.constant 0 : i32
    return %arg0, %arg1, %c0_i32 : i32, i32, i32
  }
  func.func @transform_3(%arg0: i32, %arg1: i32) -> (i32, i32) {
    %c0_i32 = arith.constant 0 : i32
    %c0_i32_0 = arith.constant 0 : i32
    %c0_i32_1 = arith.constant 0 : i32
    return %c0_i32, %c0_i32_0 : i32, i32
  }
  func.func @transform_4(%arg0: i32, %arg1: i32) -> (i32, i32) {
    %c0_i32 = arith.constant 0 : i32
    %c0_i32_0 = arith.constant 0 : i32
    %c0_i32_1 = arith.constant 0 : i32
    return %c0_i32, %c0_i32_0 : i32, i32
  }
}

</mosaic_0001>

<bundles_post_ra>
// kernel: neg.2
= control target key start
LH: loop header
LB: loop body
LE: loop exit
PB: predicated region body
PF: predicated region fallthrough
CT: control target
= control target key end

     0   :  { %s72_s0 = inlined_call_operand.vmem [shape: f32[4,512], index: 0, kind: input, shape index: {}]   ;;  %s73_s1 = inlined_call_operand.vmem [shape: f32[4,512], index: 1, kind: output, shape index: {}]  }
   0x1   :  { %v2_v0 = vld [vmem:[%s72_s0] sm:$0xf]  ;;  %v32_v1 = vld [vmem:[%s72_s0 + $0x4] sm:$0xf]  ;;  %v34_v2 = vld [vmem:[%s72_s0 + $0x8] sm:$0xf] }
   0x2   :  { %v5_v3 = vxor.u32 2147483648, %v2_v0  ;;  %v12_v4 = vxor.u32 2147483648, %v32_v1  ;;  %v20_v5 = vxor.u32 2147483648, %v34_v2  ;;  %v36_v6 = vld [vmem:[%s72_s0 + $0xc] sm:$0xf] }
   0x3   :  { %v28_v7 = vxor.u32 2147483648, %v36_v6 }
   0x4   :  { %7 = vst [vmem:[%s73_s1] sm:$0xf] %v5_v3  ;;  %33 = vst [vmem:[%s73_s1 + $0x4] sm:$0xf] %v12_v4 }
   0x5   :  { %35 = vst [vmem:[%s73_s1 + $0x8] sm:$0xf] %v20_v5  ;;  %37 = vst [vmem:[%s73_s1 + $0xc] sm:$0xf] %v28_v7 }

// kernel: combined_dice_lovasz_loss.2
= control target key start
LH: loop header
LB: loop body
LE: loop exit
PB: predicated region body
PF: predicated region fallthrough
CT: control target
= control target key end

     0   :  { %s872_s21 = smov 0   ;;  %s874_s22 = smov 0   ;;  %s939_s0 = inlined_call_operand.vmem [shape: f32[2,4,256], index: 0, kind: input, shape index: {}]   ;;  %s940_s1 = inlined_call_operand.vmem [shape: s32[2,1,256], index: 1, kind: input, shape index: {}]   ;;  %s941_s2 = inlined_call_operand.vmem [shape: f32[4,512], index: 2, kind: output, shape index: {0}]   ;;  %s942_s3 = inlined_call_operand.vmem [shape: bf16[4,512], index: 3, kind: output, shape index: {1}]   ;;  %s943_s4 = inlined_call_operand.vmem [shape: f32[2,1,4,1], index: 4, kind: output, shape index: {2}]   ;;  %s944_s5 = inlined_call_operand.vmem [shape: f32[2,1,4,1], index: 5, kind: output, shape index: {3}]   ;;  %s945_s6 = inlined_call_operand.vmem [shape: f32[2,1,4,1], index: 6, kind: output, shape index: {4}]  }
   0x1   :  { %s876_s23 = smov 0  }
   0x2 LB: > { %s29_s24 = sadd.s32 1, %s830_s22  ;;  %p764_p0 = scmp.ge.s32.totalorder %s834_s23, 1  ;;  %s834_s23 = sphi %s876_s23, %s17_s23   ;;  %s830_s22 = sphi %s874_s22, %s947_s22   ;;  %s826_s21 = sphi %s872_s21, %s946_s21  }
   0x3   : > { %p31_p1 = scmp.ge.s32.totalorder %s29_s24, 2  ;;  %p266_p2 = scmp.lt.s32.totalorder %s834_s23, 3 }
   0x5   : > { %s949_s24 = smov (%p31_p1, %s29_s24), 0  ;;  %p267_p3 = pnand %p764_p0, %p266_p2 }
   0x6   : > { %p337_p4 = scmp.lt.s32.totalorder (!%p267_p3), %s826_s21, 1  ;;  %v442_v0 = vlaneseq (!%p267_p3)  ;;  %s768_s25 = sshll.u32 (!%p267_p3), %s826_s21, 1  ;;  %vm397_vm0 = vcmask (!%p267_p3), 1043456   ;;  %v836_v14 = vmov (!%p267_p3), 0.0   ;;  %vm497_vm3 = vcmask (!%p267_p3), 3072  }
   0x7   : > { %270 = sbr.rel (%p267_p3) target bundleno = 235 (0xeb), region = 28  ;;  %p357_p5 = scmp.lt.s32.totalorder (!%p267_p3), %s768_s25, 3 }
   0x8   : > { %v443_v1 = vshrl.u32 (!%p267_p3), %v442_v0, 7 }
   0xa   : > { %v446_v2 = vsub.s32 (!%p267_p3), 0, %v443_v1  ;;  %v450_v3 = vsub.s32 (!%p267_p3), 1, %v443_v1 }
   0xe   : > { %s951_s21 = smov (!%p337_p4, %s826_s21), 1  ;;  %s953_s25 = smov (!%p357_p5, %s768_s25), 3 }
   0xf   : > { %s781_s26 = sshll.u32 %s951_s21, 3  ;;  %s767_s27 = sshll.u32 %s951_s21, 1 }
  0x10   : > { %s344_s30 = scalar_lea.vmem %s939_s0, %s781_s26  ;;  %s353_s9 = scalar_lea.vmem %s940_s1, %s767_s27 }
  0x11   : > { %v392_v4 = vld [vmem:[%s344_s30] sm:$0xff]  ;;  %s771_s10 = sshll.u32 %s953_s25, 1  ;;  %s769_s14 = sshll.u32 %s953_s25, 2 }
  0x12   : > { %v393_v5 = vld [vmem:[%s353_s9] sm:$0x3]  ;;  %v395_v6 = vcombine.high %v392_v4, %v392_v4  ;;  %v398_v7 = vsel %vm397_vm0, %v392_v4, -inf  ;;  %s368_s13 = scalar_lea.vmem %s942_s3, %s771_s10  ;;  %s360_s17 = scalar_lea.vmem %s941_s2, %s769_s14 }
  0x13   : > { %v447_v8 = vrot.slane %v393_v5, %v446_v2  ;;  %v451_v9 = vrot.slane %v393_v5, %v450_v3  ;;  %v399_v10 = vrot.slane %v398_v7, 4  ;;  %s772_s18 = sshll.u32 %s951_s21, 2 }
  0x14   : > { %v405_v11 = vsel %vm397_vm0, %v395_v6, -inf  ;;  %s391_s25 = scalar_lea.vmem %s945_s6, %s772_s18  ;;  %s377_s28 = scalar_lea.vmem %s943_s4, %s772_s18 }
  0x15   : > { %vm452_vm1 = vcmp.eq.s32.totalorder %v443_v1, %v447_v8  ;;  %vm453_vm2 = vcmp.eq.s32.totalorder %v443_v1, %v451_v9  ;;  %v400_v12 = vmax.f32 %v398_v7, %v399_v10  ;;  %v406_v13 = vrot.slane %v405_v11, 4  ;;  %s384_s7 = scalar_lea.vmem %s944_s5, %s772_s18 }
  0x16   : > { %v775_v15 = vsel %vm452_vm1, 1.0, %v836_v14  ;;  %v776_v16 = vsel %vm453_vm2, 1.0, %v836_v14 }
  0x17   : > { %v777_v17 = vpack.c.bf16 %v776_v16, %v775_v15  ;;  %v499_v18 = vsel %vm397_vm0, %v775_v15, 0.0  ;;  %v500_v19 = vsel %vm397_vm0, %v776_v16, 0.0  ;;  %v401_v20 = vrot.slane %v400_v12, 2 }
  0x18   : > { %v407_v21 = vmax.f32 %v405_v11, %v406_v13  ;;  %v501_v22 = vadd.f32 %v500_v19, %v499_v18  ;;  %v486_v50 = vcombine.low %v775_v15, %v776_v16 }
  0x19   : > { %778 = vst.sshfl [vmem:[%s368_s13] sm:$0x33 pattern:$0x76325410] %v777_v17  ;;  %v402_v23 = vmax.f32 %v400_v12, %v401_v20 }
  0x1a   : > { %v408_v24 = vrot.slane %v407_v21, 2 }
  0x1b   : > { %v403_v25 = vrot.slane %v402_v23, 1 }
  0x1c   : > { %v409_v26 = vmax.f32 %v407_v21, %v408_v24 }
  0x1d   : > { %v404_v27 = vmax.f32 %v402_v23, %v403_v25 }
  0x1e   : > { %v410_v28 = vrot.slane %v409_v26, 1 }
  0x20   : > { %v411_v29 = vmax.f32 %v409_v26, %v410_v28 }
  0x22   : > { %v414_v30 = vcombine.low %v404_v27, %v411_v29 }
  0x24   : > { %v416_v31 = vsub.f32 %v392_v4, %v414_v30 }
  0x26   : > { %v417_v32 = vmul.f32 1.442695, %v416_v31 }
  0x28   : > { %808 = vpow2.f32 %v417_v32 }
  0x32   : > { %v809_v33 = vpop.eup %808 }
  0x33   : > { %v420_v34 = vcombine.high %v809_v33, %v809_v33  ;;  %v422_v35 = vsel %vm397_vm0, %v809_v33, 0.0 }
  0x34   : > { %v423_v36 = vrot.slane %v422_v35, 4 }
  0x35   : > { %v429_v37 = vsel %vm397_vm0, %v420_v34, 0.0 }
  0x36   : > { %v424_v38 = vadd.f32 %v423_v36, %v422_v35  ;;  %v430_v39 = vrot.slane %v429_v37, 4 }
  0x38   : > { %v425_v40 = vrot.slane %v424_v38, 2  ;;  %v431_v41 = vadd.f32 %v430_v39, %v429_v37 }
  0x3a   : > { %v426_v42 = vadd.f32 %v425_v40, %v424_v38  ;;  %v432_v43 = vrot.slane %v431_v41, 2 }
  0x3c   : > { %v427_v44 = vrot.slane %v426_v42, 1  ;;  %v433_v45 = vadd.f32 %v432_v43, %v431_v41 }
  0x3e   : > { %v428_v46 = vadd.f32 %v427_v44, %v426_v42  ;;  %v434_v47 = vrot.slane %v433_v45, 1 }
  0x40   : > { %v435_v48 = vadd.f32 %v434_v47, %v433_v45 }
  0x42   : > { %v438_v49 = vcombine.low %v428_v46, %v435_v48 }
  0x44   : > { %810 = vrcp.f32 %v438_v49 }
  0x4e   : > { %v811_v51 = vpop.eup %810 }
  0x4f   : > { %v441_v52 = vmul.f32 %v811_v51, %v809_v33 }
  0x51   : > { %v488_v53 = vmul.f32 %v486_v50, %v441_v52  ;;  %v459_v54 = vcombine.high %v441_v52, %v441_v52  ;;  %v461_v55 = vsub.f32 %v775_v15, %v441_v52  ;;  %v505_v56 = vsel %vm397_vm0, %v441_v52, 0.0 }
  0x53   : > { %v490_v57 = vcombine.high %v488_v53, %v488_v53  ;;  %v492_v58 = vsel %vm397_vm0, %v488_v53, 0.0  ;;  %v506_v59 = vsel %vm397_vm0, %v459_v54, 0.0  ;;  %v463_v60 = vand.u32 2147483647, %v461_v55 }
  0x54   : > { %v507_v61 = vadd.f32 %v506_v59, %v505_v56  ;;  %v462_v62 = vsub.f32 %v776_v16, %v459_v54 }
  0x55   : > { %v493_v63 = vsel %vm397_vm0, %v490_v57, 0.0 }
  0x56   : > { %v494_v0 = vadd.f32 %v493_v63, %v492_v58  ;;  %508 = vadd.xlane.f32.xlu1 %v507_v61  ;;  %v464_v1 = vand.u32 2147483647, %v462_v62 }
  0x58   : > { %495 = vadd.xlane.f32.xlu0 %v494_v0  ;;  %v467_v2 = vcombine.low %v463_v60, %v464_v1 }
  0x5a   : > { %469 = vst [vmem:[%s360_s17] sm:$0xff] %v467_v2 }
  0x5c   : > { %502 = vadd.xlane.f32.xlu0 %v501_v22 }
  0xe3   : > { %v509_v3 = vpop.xlane.xlu1 %508 }
  0xe4   : > { %510 = vst.msk [vmem:[%s391_s25] sm:$0xf] %vm497_vm3, %v509_v3 }
  0xe5   : > { %v496_v4 = vpop.xlane.xlu0 %495 }
  0xe6   : > { %498 = vst.msk [vmem:[%s377_s28] sm:$0xf] %vm497_vm3, %v496_v4 }
  0xe9   : > { %v503_v5 = vpop.xlane.xlu0 %502 }
  0xea   : > { %504 = vst.msk [vmem:[%s384_s7] sm:$0xf] %vm497_vm3, %v503_v5 }
  0xeb PF: > { %s17_s23 = sadd.s32 1, %s834_s23   ;;  %s946_s21 = smov %s830_s22 }
  0xec   : > { %p14_p6 = scmp.ge.s32.totalorder %s17_s23, 4   ;;  %s947_s22 = smov %s949_s24 }
  0xee   :  { %16 = sbr.rel (!%p14_p6) target bundleno = 2 (0x2), region = 109 }

// kernel: combined_dice_lovasz_loss.3
= control target key start
LH: loop header
LB: loop body
LE: loop exit
PB: predicated region body
PF: predicated region fallthrough
CT: control target
= control target key end

     0   :  { %9 = vsyncpa [#allocation6], 0  ;;  %s1279_s0 = inlined_call_operand.vmem [shape: f32[1,4], index: 0, kind: input, shape index: {}]   ;;  %s1280_s1 = inlined_call_operand.vmem [shape: f32[4,8,256], index: 1, kind: input, shape index: {}]   ;;  %s1281_s2 = inlined_call_operand.vmem [shape: bf16[4,8,256], index: 2, kind: input, shape index: {}]   ;;  %s1282_s3 = inlined_call_operand.vmem [shape: bf16[256,256], index: 3, kind: input, shape index: {}]   ;;  %s1283_s4 = inlined_call_operand.hbm [shape: f32[1,1], index: 4, kind: output, shape index: {}]  }
   0x1   :  { %10 = vsyncpa [#allocation5], 0  ;;  %s1063_s15 = smov 0   ;;  %s1065_s16 = smov 0  }
   0x2   :  { %s1067_s17 = smov 0  }
   0x3 LB: > { %s790_s18 = sadd.s32 4294967295, %s1030_s17   ;;  %s28_s19 = sadd.s32 1, %s1026_s16  ;;  %s1030_s17 = sphi %s1067_s17, %s16_s17   ;;  %s1026_s16 = sphi %s1065_s16, %s1288_s16   ;;  %s1022_s15 = sphi %s1063_s15, %s1287_s15  }
   0x4   : > { %p30_p0 = scmp.ge.s32.totalorder %s28_s19, 4  ;;  %p791_p1 = scmp.ge.s32.totalorder %s1030_s17, 1 }
   0x5   : > { %p152_p2 = scmp.lt.s32.totalorder %s1030_s17, 5  ;;  %p1090_p4 = scmp.eq.s32.totalorder %s790_s18, 0 }
   0x6   : > { %s1290_s19 = smov (%p30_p0, %s28_s19), 0  ;;  %s165_s24 = sshll.u32 %s1279_s0, 4  ;;  %s166_s24 = int_to_ptr.vmem [resolvable:$true] %s165_s24 }
   0x7   : > { %p1084_p3 = pnand %p791_p1, %p152_p2  ;;  %s959_s25 = scalar_lea.vmem %s166_s24, 16 }
   0x8   : > { %p960_p7 = scmp.ne.s32.totalorder %s166_s24, %s959_s25  ;;  %p967_p11 = scmp.lt.s32.totalorder %s166_s24, %s166_s24 }
   0x9   : > { %p863_p5 = pneg %p1084_p3  ;;  %p968_p12 = scmp.lt.s32.totalorder %s959_s25, %s959_s25 }
   0xb   : > { %p864_p6 = pnand %p1090_p4, %p863_p5  ;;  %p969_p13 = por %p968_p12, %p967_p11 }
   0xd   : > { %p961_p8 = pneg %p864_p6 }
   0xf   : > { %p962_p9 = pnand %p961_p8, %p960_p7 }
  0x11   : > { %p963_p10 = pneg %p962_p9 }
  0x13   : > { %p970_p0 = pnand %p969_p13, %p963_p10 }
  0x15   : > { %973 = shalt.err (!%p970_p0)
}
  0x16   : > { %s1032_s26 = smov [#allocation4]   ;;  %205 = sbr.rel (%p1084_p3) target bundleno = 753 (0x2f1), region = 36 }
  0x17   : > { %866 = dma.vmem_to_smem (!%p864_p6), %s166_s24, 16, %s1032_s26, [#allocation6]  }
  0x1d   : > { %1013 = dma.done.wait (%p1090_p4), [#allocation6], 16  }
  0x1e   : > { %1015 = vsyncadd (%p1090_p4), [#allocation6], 4294967280 }
  0x1f   : > { %211 = sfence }
  0x20   : > { %p240_p1 = scmp.lt.s32.totalorder %s1022_s15, 3  ;;  %p258_p2 = scmp.eq.s32.totalorder %s1022_s15, 0 }
  0x21   : > { %vm264_vm0 = vcmask (%p258_p2), 0   ;;  %v1033_v0 = vmov (%p258_p2), 0.0  }
  0x22   : > { %s241_s27 = scalar_select %p240_p1, %s1022_s15, 3 }
  0x23   : > { %263 = sbr.rel (!%p258_p2) target bundleno = 42 (0x2a), region = 44  ;;  %265 = vst.msk [vmem:[#allocation3] sm:$0x1] (%p258_p2), %vm264_vm0, %v1033_v0 }
  0x24   : > { %s844_s28 = sshll.u32 %s241_s27, 4  ;;  %s845_s29 = sshll.u32 %s241_s27, 3 }
  0x25   : > { %s1113_s6 = scalar_lea.vmem %s1280_s1, %s844_s28  ;;  %s257_s9 = scalar_lea.vmem %s1281_s2, %s845_s29 }
  0x2a PF: > { %v1118_v1 = vld [vmem:[%s257_s9] sm:$0xff]  ;;  %v1034_v5 = vmov 0.0   ;;  %vm1035_vm1 = vmmov 0   ;;  %vm269_vm2 = vcmask 0   ;;  %v906_v8 = vld [vmem:[%s1282_s3 + $0x14] ss:$8 sps:$4 sm:$0xff]   ;;  %v311_v41 = vlaneseq }
  0x2b   : > { %v274_v2 = vunpack.c.l.bf16 %v1118_v1  ;;  %v275_v3 = vunpack.c.h.bf16 %v1118_v1  ;;  %850 = vmatprep.subr.mxu0 %v1034_v5  ;;  %852 = vmatprep.mubr.msk.f32.mxu0 %vm1035_vm1, %v1034_v5  ;;  %270 = vst.msk [vmem:[#allocation2] sm:$0x1] %vm269_vm2, %v1034_v5  ;;  %v903_v6 = vld [vmem:[%s1282_s3 + $0x4] ss:$8 sps:$4 sm:$0xff]   ;;  %v905_v7 = vld [vmem:[%s1282_s3] ss:$8 sps:$4 sm:$0xff]   ;;  %v804_v9 = vcombine.high %v1118_v1, %v1118_v1  ;;  %v803_v40 = vcombine.low %v1118_v1, %v1118_v1 }
  0x2c   : > { %565 = vmatprep.subr.bf16.mxu1 %v903_v6  ;;  %v908_v10 = vld [vmem:[%s1282_s3 + $0x10] ss:$8 sps:$4 sm:$0xff]   ;;  %v909_v11 = vld [vmem:[%s1282_s3 + $0x24] ss:$8 sps:$4 sm:$0xff]   ;;  %v911_v12 = vld [vmem:[%s1282_s3 + $0x20] ss:$8 sps:$4 sm:$0xff]  }
  0x2d   : > { %v308_v4 = vadd.f32 %v275_v3, %v274_v2  ;;  %597 = vmatprep.mubr.bf16.mxu1 %v804_v9  ;;  %566 = vmatpush1.bf16.msra.mxu1 %v905_v7  ;;  %v912_v13 = vld [vmem:[%s1282_s3 + $0x34] ss:$8 sps:$4 sm:$0xff]   ;;  %v914_v14 = vld [vmem:[%s1282_s3 + $0x30] ss:$8 sps:$4 sm:$0xff]   ;;  %v1036_v15 = vmov 0   ;;  %v312_v42 = vshrl.u32 %v311_v41, 7 }
  0x2e   : > { %567 = vmatprep.subr.bf16.mxu1 %v906_v8  ;;  %901 = vset.pattern.permute.xlu0 %v1036_v15  ;;  %v915_v16 = vld [vmem:[%s1282_s3 + $0x44] ss:$8 sps:$4 sm:$0xff]   ;;  %v917_v17 = vld [vmem:[%s1282_s3 + $0x40] ss:$8 sps:$4 sm:$0xff]   ;;  %v918_v18 = vld [vmem:[%s1282_s3 + $0x54] ss:$8 sps:$4 sm:$0xff]  }
  0x2f   : > { %309 = vadd.xlane.f32.xlu0 %v308_v4  ;;  %902 = vset.pattern.permute.xlu1 %v1036_v15  ;;  %v920_v19 = vld [vmem:[%s1282_s3 + $0x50] ss:$8 sps:$4 sm:$0xff]   ;;  %v921_v20 = vld [vmem:[%s1282_s3 + $0x64] ss:$8 sps:$4 sm:$0xff]   ;;  %v923_v21 = vld [vmem:[%s1282_s3 + $0x60] ss:$8 sps:$4 sm:$0xff]  }
  0x30   : > { %v924_v22 = vld [vmem:[%s1282_s3 + $0x74] ss:$8 sps:$4 sm:$0xff]   ;;  %v926_v23 = vld [vmem:[%s1282_s3 + $0x70] ss:$8 sps:$4 sm:$0xff]   ;;  %v927_v24 = vld [vmem:[%s1282_s3 + $0x84] ss:$8 sps:$4 sm:$0xff]  }
  0x31   : > { %568 = vmatpush1.bf16.msra.mxu1 %v908_v10  ;;  %v929_v25 = vld [vmem:[%s1282_s3 + $0x80] ss:$8 sps:$4 sm:$0xff]   ;;  %v930_v26 = vld [vmem:[%s1282_s3 + $0x94] ss:$8 sps:$4 sm:$0xff]   ;;  %v932_v27 = vld [vmem:[%s1282_s3 + $0x90] ss:$8 sps:$4 sm:$0xff]  }
  0x32   : > { %569 = vmatprep.subr.bf16.mxu1 %v909_v11  ;;  %v933_v28 = vld [vmem:[%s1282_s3 + $0xa4] ss:$8 sps:$4 sm:$0xff]   ;;  %v935_v29 = vld [vmem:[%s1282_s3 + $0xa0] ss:$8 sps:$4 sm:$0xff]   ;;  %v936_v30 = vld [vmem:[%s1282_s3 + $0xb4] ss:$8 sps:$4 sm:$0xff]  }
  0x33   : > { %v938_v31 = vld [vmem:[%s1282_s3 + $0xb0] ss:$8 sps:$4 sm:$0xff]   ;;  %v939_v32 = vld [vmem:[%s1282_s3 + $0xc4] ss:$8 sps:$4 sm:$0xff]   ;;  %v941_v33 = vld [vmem:[%s1282_s3 + $0xc0] ss:$8 sps:$4 sm:$0xff]  }
  0x34   : > { %v942_v34 = vld [vmem:[%s1282_s3 + $0xd4] ss:$8 sps:$4 sm:$0xff]   ;;  %v944_v35 = vld [vmem:[%s1282_s3 + $0xd0] ss:$8 sps:$4 sm:$0xff]   ;;  %v945_v36 = vld [vmem:[%s1282_s3 + $0xe4] ss:$8 sps:$4 sm:$0xff]  }
  0x35   : > { %570 = vmatpush1.bf16.msra.mxu1 %v911_v12  ;;  %v947_v37 = vld [vmem:[%s1282_s3 + $0xe0] ss:$8 sps:$4 sm:$0xff]   ;;  %v948_v38 = vld [vmem:[%s1282_s3 + $0xf4] ss:$8 sps:$4 sm:$0xff]   ;;  %v950_v39 = vld [vmem:[%s1282_s3 + $0xf0] ss:$8 sps:$4 sm:$0xff]  }
  0x36   : > { %571 = vmatprep.subr.bf16.mxu1 %v912_v13  ;;  %v314_v43 = vand.u32 127, %v311_v41  ;;  %vm318_vm4 = vcmask 64512   ;;  %v392_v51 = vld [vmem:[#allocation2] sm:$0x1]  ;;  %v609_v54 = vsub.s32 0, %v312_v42  ;;  %v620_v63 = vmul.u32 256, %v312_v42 }
  0x37   : > { %s617_s14 = sld [smem:[#allocation4 + %s1022_s15]]  ;;  %v272_v41 = vld [vmem:[%s1113_s6 + $0x8] sm:$0xff]  ;;  %p685_p3 = scmp.eq.s32.totalorder %s1022_s15, 3 }
  0x38   : > { %vm315_vm3 = vcmp.gt.s32.totalorder %v312_v42, %v314_v43  ;;  %v610_v55 = vrot.slane %v392_v51, %v609_v54  ;;  %v618_v62 = vadd.s32 128, %v314_v43  ;;  %v623_v0 = vadd.s32 %v620_v63, %v314_v43  ;;  %v673_v54 = vld [vmem:[#allocation3] sm:$0x1] }
  0x39   : > { %572 = vmatpush1.bf16.msra.mxu1 %v914_v14  ;;  %v801_v44 = vsel %vm315_vm3, 1.0, %v1034_v5 }
  0x3a   : > { %573 = vmatprep.subr.bf16.mxu1 %v915_v16  ;;  %612 = vperm.xlu1 %902, %v610_v55   ;;  %v624_v4 = vadd.s32 %v620_v63, %v618_v62  ;;  %v625_v5 = vadd.s32 1, %v623_v0 }
  0x3c   : > { %v626_v6 = vadd.s32 1, %v624_v4  ;;  %v627_v7 = vcvt.s32.f32 %v625_v5 }
  0x3d   : > { %574 = vmatpush1.bf16.msra.mxu1 %v917_v17  ;;  %v629_v9 = vstv %s617_s14 }
  0x3e   : > { %575 = vmatprep.subr.bf16.mxu1 %v918_v18  ;;  %v628_v8 = vcvt.s32.f32 %v626_v6  ;;  %v837_v11 = vadd.f32 -1.0, %v627_v7  ;;  %v632_v16 = vadd.f32 %v629_v9, %v627_v7 }
  0x40   : > { %v838_v12 = vadd.f32 -1.0, %v628_v8  ;;  %v633_v17 = vadd.f32 %v629_v9, %v628_v8 }
  0x41   : > { %576 = vmatpush1.bf16.msra.mxu1 %v920_v19 }
  0x42   : > { %577 = vmatprep.subr.bf16.mxu1 %v921_v20  ;;  %v642_v20 = vadd.f32 %v837_v11, %v629_v9 }
  0x45   : > { %578 = vmatpush1.bf16.msra.mxu1 %v923_v21  ;;  %v643_v21 = vadd.f32 %v838_v12, %v629_v9 }
  0x46   : > { %579 = vmatprep.subr.bf16.mxu1 %v924_v22 }
  0x49   : > { %580 = vmatpush1.bf16.msra.mxu1 %v926_v23 }
  0x4a   : > { %581 = vmatprep.subr.bf16.mxu1 %v927_v24 }
  0x4d   : > { %582 = vmatpush1.bf16.msra.mxu1 %v929_v25 }
  0x4e   : > { %583 = vmatprep.subr.bf16.mxu1 %v930_v26 }
  0x51   : > { %584 = vmatpush1.bf16.msra.mxu1 %v932_v27 }
  0x52   : > { %585 = vmatprep.subr.bf16.mxu1 %v933_v28 }
  0x55   : > { %586 = vmatpush1.bf16.msra.mxu1 %v935_v29 }
  0x56   : > { %587 = vmatprep.subr.bf16.mxu1 %v936_v30 }
  0x59   : > { %588 = vmatpush1.bf16.msra.mxu1 %v938_v31 }
  0x5a   : > { %589 = vmatprep.subr.bf16.mxu1 %v939_v32 }
  0x5d   : > { %590 = vmatpush1.bf16.msra.mxu1 %v941_v33 }
  0x5e   : > { %591 = vmatprep.subr.bf16.mxu1 %v942_v34 }
  0x61   : > { %592 = vmatpush1.bf16.msra.mxu1 %v944_v35 }
  0x62   : > { %593 = vmatprep.subr.bf16.mxu1 %v945_v36 }
  0x65   : > { %594 = vmatpush1.bf16.msra.mxu1 %v947_v37 }
  0x66   : > { %595 = vmatprep.subr.bf16.mxu1 %v948_v38  ;;  %v271_v38 = vld [vmem:[%s1113_s6] sm:$0xff] }
  0x69   : > { %596 = vmatpush1.bf16.msra.mxu1 %v950_v39 }
  0x6c   : > { %598 = vmatmul.mubr.bf16.vlgmr.msra.gmra.mrb[0].mxu1 %v803_v40 }
  0xb9   : > { %v613_v13 = vpop.permute.xlu1 %612 }
  0xbc   : > { %v310_v45 = vpop.xlane.xlu0 %309 }
  0xbd   : > { %v677_v46 = vrot.slane %v310_v45, 4  ;;  %851 = vmatpush3.msra.mxu0 %v310_v45 }
  0xbe   : > { %853 = vmatmul.mubr.msk.f32.vlgmr.msra.gmra.mrb[0].mxu0 %vm318_vm4, %v801_v44 }
  0xbf   : > { %v678_v47 = vadd.f32 %v677_v46, %v310_v45 }
  0xc1   : > { %v679_v48 = vrot.slane %v678_v47, 2 }
  0xc3   : > { %v680_v49 = vadd.f32 %v679_v48, %v678_v47 }
  0xc5   : > { %v681_v50 = vrot.slane %v680_v49, 1 }
  0xc7   : > { %v682_v52 = vadd.f32 %v681_v50, %v680_v49 }
  0xc9   : > { %v683_v53 = vadd.f32 %v682_v52, %v392_v51 }
  0xcb   : > { %684 = vst.msk [vmem:[#allocation2] sm:$0x1] %vm269_vm2, %v683_v53 }
 0x13f   : > { %v599_v56 = vpop.f32.mrb[0].mxu1 }
 0x140   : > { %v601_v57 = vpop.f32.mrb[1].mxu1 }
 0x141   : > { %v603_v58 = vpop.f32.mrb[2].mxu1 }
 0x142   : > { %v604_v59 = vpop.f32.mrb[3].mxu1 }
 0x191   : > { %v388_v60 = vpop.f32.mrb[0].mxu0 }
 0x192   : > { %395 = vperm.xlu0 %901, %v388_v60   ;;  %v854_v61 = vpop.f32.mrb[1].mxu0 }
 0x211   : > { %v396_v10 = vpop.permute.xlu0 %395 }
 0x212   : > { %v600_v14 = vadd.f32 %v599_v56, %v396_v10  ;;  %v602_v15 = vadd.f32 %v601_v57, %v396_v10 }
 0x214   : > { %v615_v18 = vadd.f32 %v613_v13, %v600_v14  ;;  %v616_v19 = vadd.f32 %v613_v13, %v602_v15 }
 0x216   : > { %v634_v22 = vsub.f32 %v632_v16, %v615_v18  ;;  %v636_v23 = vsub.f32 %v615_v18, %v274_v2  ;;  %v637_v24 = vsub.f32 %v616_v19, %v275_v3  ;;  %v635_v25 = vsub.f32 %v633_v17, %v616_v19 }
 0x217   : > { %v630_v34 = vsub.f32 %v629_v9, %v615_v18  ;;  %v631_v1 = vsub.f32 %v629_v9, %v616_v19 }
 0x218   : > { %v644_v26 = vsub.f32 %v642_v20, %v636_v23  ;;  %v645_v27 = vsub.f32 %v643_v21, %v637_v24  ;;  %951 = vrcp.f32 %v634_v22  ;;  %v638_v32 = vsub.f32 %v629_v9, %v636_v23 }
 0x219   : > { %953 = vrcp.f32 %v635_v25  ;;  %v639_v2 = vsub.f32 %v629_v9, %v637_v24 }
 0x21a   : > { %v652_v28 = vmax.f32 %v644_v26, 1.0  ;;  %v653_v29 = vmax.f32 %v645_v27, 1.0  ;;  %vm650_vm5 = vcmp.gt.f32.partialorder %v644_v26, 0.0  ;;  %vm651_vm6 = vcmp.gt.f32.partialorder %v645_v27, 0.0 }
 0x21c   : > { %955 = vrcp.f32 %v652_v28 }
 0x21d   : > { %957 = vrcp.f32 %v653_v29 }
 0x222   : > { %v952_v30 = vpop.eup %951 }
 0x223   : > { %v954_v31 = vpop.eup %953  ;;  %v647_v36 = vmul.f32 %v952_v30, %v630_v34 }
 0x224   : > { %v649_v39 = vmul.f32 %v954_v31, %v631_v1 }
 0x226   : > { %v956_v33 = vpop.eup %955 }
 0x227   : > { %v958_v35 = vpop.eup %957  ;;  %v655_v3 = vmul.f32 %v956_v33, %v638_v32 }
 0x228   : > { %v657_v37 = vmul.f32 %v958_v35, %v639_v2 }
 0x229   : > { %v658_v40 = vsel %vm650_vm5, %v655_v3, 1.0 }
 0x22a   : > { %v659_v42 = vsel %vm651_vm6, %v657_v37, 1.0  ;;  %v660_v43 = vsub.f32 %v658_v40, %v647_v36 }
 0x22b   : > { %v661_v44 = vsub.f32 %v659_v42, %v649_v39 }
 0x22c   : > { %v662_v45 = vmul.f32 %v660_v43, %v271_v38 }
 0x22d   : > { %v663_v46 = vmul.f32 %v661_v44, %v272_v41 }
 0x22f   : > { %v664_v47 = vadd.f32 %v663_v46, %v662_v45 }
 0x231   : > { %665 = vadd.xlane.f32.xlu1 %v664_v47 }
 0x2be   : > { %v666_v48 = vpop.xlane.xlu1 %665 }
 0x2bf   : > { %v667_v49 = vrot.slane %v666_v48, 4 }
 0x2c1   : > { %v668_v50 = vadd.f32 %v667_v49, %v666_v48 }
 0x2c3   : > { %v669_v51 = vrot.slane %v668_v50, 2 }
 0x2c5   : > { %v670_v52 = vadd.f32 %v669_v51, %v668_v50 }
 0x2c7   : > { %v671_v53 = vrot.slane %v670_v52, 1  ;;  %689 = sbr.rel (!%p685_p3) target bundleno = 728 (0x2d8), region = 52 }
 0x2c9   : > { %v672_v55 = vadd.f32 %v671_v53, %v670_v52 }
 0x2cb   : > { %v674_v56 = vadd.f32 %v673_v54, %v672_v55 }
 0x2cd   : > { %676 = vst.msk [vmem:[#allocation3] sm:$0x1] %vm269_vm2, %v674_v56 }
 0x2d4   : > { %v690_v57 = vld [vmem:[#allocation3] sm:$0x1] }
 0x2d5   : > { %v691_v58 = vmul.f32 0.25, %v690_v57 }
 0x2d7   : > { %692 = vst.msk [vmem:[#allocation7] sm:$0x1] %vm269_vm2, %v691_v58 }
 0x2d8 PF: > { %p1244_p4 = scmp.eq.s32.totalorder %s790_s18, 3  ;;  %s1037_s6 = smov [#allocation7]  }
 0x2d9   : > { %s700_s20 = sshll.u32 %s1037_s6, 4  ;;  %s701_s20 = int_to_ptr.vmem [resolvable:$true] %s700_s20 }
 0x2da   : > { %s974_s21 = scalar_lea.vmem %s701_s20, 16  ;;  %s980_s22 = scalar_lea.vmem %s701_s20, 32 }
 0x2db   : > { %p975_p5 = scmp.ne.s32.totalorder %s701_s20, %s974_s21  ;;  %p981_p8 = scmp.lt.s32.totalorder %s701_s20, %s701_s20 }
 0x2dc   : > { %p982_p9 = scmp.lt.s32.totalorder %s980_s22, %s974_s21 }
 0x2dd   : > { %p976_p6 = pnand %p975_p5, %p1244_p4 }
 0x2de   : > { %p983_p10 = por %p982_p9, %p981_p8 }
 0x2df   : > { %p977_p7 = pneg %p976_p6 }
 0x2e1   : > { %p984_p11 = pnand %p983_p10, %p977_p7 }
 0x2e3   : > { %987 = shalt.err (!%p984_p11)
}
 0x2e4   : > { %s988_s24 = scalar_lea.hbm %s1283_s4, 16 }
 0x2e5   : > { %p989_p12 = scmp.ne.s32.totalorder %s1283_s4, %s988_s24  ;;  %p994_p1 = scmp.lt.u32.totalorder %s988_s24, %s1283_s4 }
 0x2e7   : > { %p990_p13 = pnand %p989_p12, %p1244_p4 }
 0x2e9   : > { %p991_p0 = pneg %p990_p13 }
 0x2eb   : > { %p996_p2 = pnand %p994_p1, %p991_p0 }
 0x2ed   : > { %999 = shalt.err (!%p996_p2)
}
 0x2ee   : > { %860 = dma.vmem_to_hbm [thread:$0]  (%p1244_p4), %s701_s20, 16, %s1283_s4, [#allocation5]  }
 0x2ef   : > { %1017 = dma.done.wait (%p1244_p4), [#allocation5], 16  }
 0x2f0   : > { %1019 = vsyncadd (%p1244_p4), [#allocation5], 4294967280 }
 0x2f1 PF: > { %s16_s17 = sadd.s32 1, %s1030_s17   ;;  %s1287_s15 = smov %s1026_s16 }
 0x2f2   : > { %p13_p3 = scmp.ge.s32.totalorder %s16_s17, 6   ;;  %s1288_s16 = smov %s1290_s19 }
 0x2f4   :  { %15 = sbr.rel (!%p13_p3) target bundleno = 3 (0x3), region = 83 }
 0x2fb   :  { %713 = vsyncpa [#allocation5], 1 }
 0x2fc   :  { %715 = vsyncpa [#allocation5 + $0x1], 1 }
 0x2fd   :  { %716 = vsyncpa [#allocation6], 1 }
 0x2fe   :  { %718 = vsyncpa [#allocation6 + $0x1], 1 }

</bundles_post_ra>
